<compile_context>
chip_gen: v7x
topology: tpu7x:2x2x1
jax: 0.10.0
libtpu: 0.0.40
codegen_flags: <defaults>
</compile_context>

<pallas_src>
import functools

import jax
import jax.numpy as jnp
from jax.experimental import pallas as pl
from jax.experimental.pallas import tpu as pltpu


def _round_up(x, m):
    return (x + m - 1) // m * m


def _default_vmem_budget_bytes():
    """~75% of physical VMEM: ~96 MiB on 128 MiB parts (v5e/v6e), ~48 MiB on v7x."""
    cap = 64 * 1024 * 1024  # conservative fallback (v7x-sized)
    try:
        info = pltpu.get_tpu_info()
        cap = int(getattr(info, "vmem_capacity_bytes", cap) or cap)
    except Exception:
        pass
    return (cap * 3) // 4


def _vmem_bytes(tb, tk, hp, cp, x_itemsize, fused):
    """Conservative kernel VMEM footprint (every pallas_call operand double-buffered)."""
    x_buf = 2 * tb * tk * x_itemsize
    w1_buf = 2 * tk * hp * 2            # bf16 panel (or whole W1 when fused)
    b1_buf = 2 * hp * 4
    w2_buf = 2 * hp * cp * 2            # bf16, resident
    b2_buf = 2 * cp * 4
    out_buf = 2 * tb * cp * 4
    acc_buf = 0 if fused else tb * hp * 4
    return x_buf + w1_buf + b1_buf + w2_buf + b2_buf + out_buf + acc_buf


# ----------------------------------------------------------------------------
# Kernels
# ----------------------------------------------------------------------------
def _mlp_kernel_fused(x_ref, w1_ref, b1_ref, w2_ref, b2_ref, out_ref):
    """sigmoid( sigmoid(x @ W1 + b1) @ W2 + b2 ); W1 fully VMEM-resident (no K axis).

    x_ref : (TB, Dp) f32 or bf16   batch tile
    w1_ref: (Dp, Hp) bf16          resident
    b1_ref: (1,  Hp) f32
    w2_ref: (Hp, Cp) bf16          resident
    b2_ref: (1,  Cp) f32
    out_ref:(TB, Cp) f32
    """
    x = x_ref[...].astype(jnp.bfloat16)                       # MXU operand
    h = jnp.dot(x, w1_ref[...], preferred_element_type=jnp.float32)
    h = jax.nn.sigmoid(h + b1_ref[...])                       # f32 epilogue (v5e: no bf16 VPU/EUP)
    o = jnp.dot(h.astype(jnp.bfloat16), w2_ref[...],
                preferred_element_type=jnp.float32)
    out_ref[...] = jax.nn.sigmoid(o + b2_ref[...]).astype(out_ref.dtype)


def _mlp_kernel_ktiled(x_ref, w1_ref, b1_ref, w2_ref, b2_ref, out_ref, h_acc):
    """Fallback when W1 cannot be VMEM-resident: K-tiled layer 1 with f32 accumulator."""
    k = pl.program_id(1)

    @pl.when(k == 0)
    def _():
        h_acc[...] = jnp.zeros_like(h_acc)

    x = x_ref[...].astype(jnp.bfloat16)
    h_acc[...] += jnp.dot(x, w1_ref[...], preferred_element_type=jnp.float32)

    @pl.when(k == pl.num_programs(1) - 1)
    def _():
        h = jax.nn.sigmoid(h_acc[...] + b1_ref[...])
        o = jnp.dot(h.astype(jnp.bfloat16), w2_ref[...],
                    preferred_element_type=jnp.float32)
        out_ref[...] = jax.nn.sigmoid(o + b2_ref[...]).astype(out_ref.dtype)


# ----------------------------------------------------------------------------
# Parameter prep (hoisted out of the per-call forward)
# ----------------------------------------------------------------------------
def prepare_params(w1, b1, w2, b2):
    """Pad/cast parameters once. Weights stored [in_features, out_features].

    Zero padding is exact through the fused math: padded x columns hit zero W1
    rows; padded hidden units (sigmoid(0)=0.5) multiply zero W2 rows; padded
    batch rows / class columns are sliced off in the wrapper.
    """
    D, H = w1.shape
    C = w2.shape[1]
    Dp, Hp, Cp = _round_up(D, 128), _round_up(H, 128), _round_up(C, 128)
    w1p = jnp.zeros((Dp, Hp), jnp.bfloat16).at[:D, :H].set(w1.astype(jnp.bfloat16))
    b1p = jnp.zeros((1, Hp), jnp.float32).at[0, :H].set(b1.astype(jnp.float32))
    w2p = jnp.zeros((Hp, Cp), jnp.bfloat16).at[:H, :C].set(w2.astype(jnp.bfloat16))
    b2p = jnp.zeros((1, Cp), jnp.float32).at[0, :C].set(b2.astype(jnp.float32))
    return {"w1p": w1p, "b1p": b1p, "w2p": w2p, "b2p": b2p,
            "dims": (D, H, C, Dp, Hp, Cp)}


# ----------------------------------------------------------------------------
# Forward
# ----------------------------------------------------------------------------
@functools.partial(jax.jit, static_argnames=("dims", "vmem_budget_bytes"))
def _forward_impl(x, w1p, b1p, w2p, b2p, *, dims, vmem_budget_bytes):
    D, H, C, Dp, Hp, Cp = dims
    B = x.shape[0]
    x2d = x.reshape(B, -1)                                    # nn.Flatten()
    if x2d.shape[1] != D:
        raise ValueError(f"flattened input dim {x2d.shape[1]} != expected {D}")

    # ---- Batch tiling (grid axis 0, "parallel"). ----------------------------
    TB = min(512, _round_up(B, 16))
    # v7x has 2 TensorCores; the parallel batch axis is the only megacore
    # sharding lever, so guarantee >= 2 batch tiles when there is enough work.
    if B >= 32 and _round_up(B, TB) // TB < 2:
        TB = _round_up(-(-B // 2), 16)
    Bp = _round_up(B, TB)

    # ---- K (input_dim) policy: resident W1 if it fits the VMEM budget. ------
    pad_x = (D != Dp) or (B != Bp)
    x_itemsize = 2 if pad_x else x2d.dtype.itemsize
    fused = _vmem_bytes(TB, Dp, Hp, Cp, x_itemsize, fused=True) <= vmem_budget_bytes
    if fused:
        TK = Dp
    else:
        TK = 128                                              # always-legal fallback
        for cand in (2048, 1024, 512, 256):                   # prefer big K panels
            if cand < Dp and Dp % cand == 0 and _vmem_bytes(
                    TB, cand, Hp, Cp, x_itemsize, fused=False) <= vmem_budget_bytes:
                TK = cand
                break

    # ---- x: avoid the materialized padded copy when already tile-aligned. ---
    if pad_x:
        xp = jnp.zeros((Bp, Dp), jnp.bfloat16).at[:B, :D].set(x2d.astype(jnp.bfloat16))
    else:
        xp = x2d                                              # cast to bf16 in-kernel

    vmem_limit = int(vmem_budget_bytes) + (8 << 20)           # headroom for Mosaic scratch

    if fused:
        out = pl.pallas_call(
            _mlp_kernel_fused,
            out_shape=jax.ShapeDtypeStruct((Bp, Cp), jnp.float32),
            grid_spec=pltpu.PrefetchScalarGridSpec(
                num_scalar_prefetch=0,
                grid=(Bp // TB,),
                in_specs=[
                    pl.BlockSpec((TB, Dp), lambda i: (i, 0)),   # x: batch tiled
                    pl.BlockSpec((Dp, Hp), lambda i: (0, 0)),   # W1: VMEM resident
                    pl.BlockSpec((1, Hp), lambda i: (0, 0)),    # b1: resident
                    pl.BlockSpec((Hp, Cp), lambda i: (0, 0)),   # W2: resident
                    pl.BlockSpec((1, Cp), lambda i: (0, 0)),    # b2: resident
                ],
                out_specs=pl.BlockSpec((TB, Cp), lambda i: (i, 0)),
            ),
            compiler_params=pltpu.CompilerParams(
                dimension_semantics=("parallel",),
                vmem_limit_bytes=vmem_limit,
            ),
        )(xp, w1p, b1p, w2p, b2p)
    else:
        out = pl.pallas_call(
            _mlp_kernel_ktiled,
            out_shape=jax.ShapeDtypeStruct((Bp, Cp), jnp.float32),
            grid_spec=pltpu.PrefetchScalarGridSpec(
                num_scalar_prefetch=0,
                grid=(Bp // TB, Dp // TK),                      # K last (reduction)
                in_specs=[
                    pl.BlockSpec((TB, TK), lambda i, k: (i, k)),  # x: batch & K tiled
                    pl.BlockSpec((TK, Hp), lambda i, k: (k, 0)),  # W1: K panels
                    pl.BlockSpec((1, Hp), lambda i, k: (0, 0)),
                    pl.BlockSpec((Hp, Cp), lambda i, k: (0, 0)),  # W2: resident
                    pl.BlockSpec((1, Cp), lambda i, k: (0, 0)),
                ],
                out_specs=pl.BlockSpec((TB, Cp), lambda i, k: (i, 0)),
                scratch_shapes=[pltpu.VMEM((TB, Hp), jnp.float32)],
            ),
            compiler_params=pltpu.CompilerParams(
                dimension_semantics=("parallel", "arbitrary"),
                vmem_limit_bytes=vmem_limit,
            ),
        )(xp, w1p, b1p, w2p, b2p)

    # Slice away padding; torch.sigmoid(out).squeeze() semantics (also drops the
    # batch dim if B == 1 and the class dim if C == 1, exactly like torch).
    return jnp.squeeze(out[:B, :C])


def two_layer_net_forward(x, prep, vmem_budget_bytes=None):
    """x: [B, ...] -> flatten -> Linear/Sigmoid/Linear -> sigmoid -> squeeze."""
    if vmem_budget_bytes is None:
        vmem_budget_bytes = _default_vmem_budget_bytes()
    return _forward_impl(x, prep["w1p"], prep["b1p"], prep["w2p"], prep["b2p"],
                         dims=prep["dims"],
                         vmem_budget_bytes=int(vmem_budget_bytes))


def init_params(key, input_dim, hidden_size, num_classes):
    """PyTorch-style Linear init: U(-1/sqrt(fan_in), 1/sqrt(fan_in)).

    Weights stored as [in_features, out_features] (transposed vs PyTorch)."""
    k1, k2, k3, k4 = jax.random.split(key, 4)
    bound1 = 1.0 / jnp.sqrt(jnp.float32(input_dim))
    bound2 = 1.0 / jnp.sqrt(jnp.float32(hidden_size))
    w1 = jax.random.uniform(k1, (input_dim, hidden_size), jnp.float32, -bound1, bound1)
    b1 = jax.random.uniform(k2, (hidden_size,), jnp.float32, -bound1, bound1)
    w2 = jax.random.uniform(k3, (hidden_size, num_classes), jnp.float32, -bound2, bound2)
    b2 = jax.random.uniform(k4, (num_classes,), jnp.float32, -bound2, bound2)
    return w1, b1, w2, b2


def _reference(x, w1, b1, w2, b2):
    x2d = x.reshape(x.shape[0], -1)
    return jnp.squeeze(jax.nn.sigmoid(jax.nn.sigmoid(x2d @ w1 + b1) @ w2 + b2))


if __name__ == "__main__":
    # x: [B, C, H, W] = [4, 4, 16, 16] -> flatten -> input_dim = 1024.
    B, C_in, H_sp, W_sp = 4, 4, 16, 16
    input_dim = C_in * H_sp * W_sp        # 1024
    hidden_size = 32
    num_classes = 10

    key = jax.random.PRNGKey(0)
    kx, kx2, kp = jax.random.split(key, 3)
    x = jax.random.normal(kx, (B, C_in, H_sp, W_sp), dtype=jnp.float32)
    w1, b1, w2, b2 = init_params(kp, input_dim, hidden_size, num_classes)
    prep = prepare_params(w1, b1, w2, b2)

    # Pure-JAX f32 reference; kernel feeds the MXU bf16 (f32 accumulate), so
    # use a loosened tolerance.
    tol = dict(atol=2e-2, rtol=2e-2)

    # 1) Default path (fused, W1 resident; small batch -> padded bf16 x).
    out = jax.block_until_ready(two_layer_net_forward(x, prep))
    ref = _reference(x, w1, b1, w2, b2)
    assert out.shape == ref.shape, (out.shape, ref.shape)
    assert jnp.allclose(out, ref, **tol), "fused (padded-x) path mismatch"

    # 2) Aligned batch (B=32): no x copy (f32 passed through, cast in-kernel),
    #    two batch tiles so v7x megacore sharding is exercised.
    x32 = jax.random.normal(kx2, (32, C_in, H_sp, W_sp), dtype=jnp.float32)
    out32 = jax.block_until_ready(two_layer_net_forward(x32, prep))
    ref32 = _reference(x32, w1, b1, w2, b2)
    assert out32.shape == ref32.shape
    assert jnp.allclose(out32, ref32, **tol), "fused (aligned-x) path mismatch"

    # 3) Force the K-tiled fallback (tiny budget) to keep that path correct.
    out_kt = jax.block_until_ready(
        two_layer_net_forward(x, prep, vmem_budget_bytes=512 * 1024))
    assert out_kt.shape == ref.shape
    assert jnp.allclose(out_kt, ref, **tol), "K-tiled fallback mismatch"

    print("KERNEL_OK")
</pallas_src>

<mosaic_0001>
module attributes {stable_mosaic.version = 11 : i64} {
  func.func @_mlp_kernel_fused(%arg0: i32, %arg1: memref<16x1024xbf16, #tpu.memory_space<vmem>>, %arg2: memref<1024x128xbf16, #tpu.memory_space<vmem>>, %arg3: memref<1x128xf32, #tpu.memory_space<vmem>>, %arg4: memref<128x128xbf16, #tpu.memory_space<vmem>>, %arg5: memref<1x128xf32, #tpu.memory_space<vmem>>, %arg6: memref<16x128xf32, #tpu.memory_space<vmem>>) attributes {dimension_semantics = [#tpu.dimension_semantics<parallel>], iteration_bounds = array<i64: 1>, scalar_prefetch = 0 : i64, scratch_operands = 0 : i64, tpu.core_type = #tpu.core_type<tc>, window_params = [{transform_indices = @transform_0, window_bounds = array<i64: 16, 1024>}, {pipeline_mode = #tpu.pipeline_mode<synchronous>, transform_indices = @transform_1, window_bounds = array<i64: 1024, 128>}, {pipeline_mode = #tpu.pipeline_mode<synchronous>, transform_indices = @transform_2, window_bounds = array<i64: 1, 128>}, {pipeline_mode = #tpu.pipeline_mode<synchronous>, transform_indices = @transform_3, window_bounds = array<i64: 128, 128>}, {pipeline_mode = #tpu.pipeline_mode<synchronous>, transform_indices = @transform_4, window_bounds = array<i64: 1, 128>}, {transform_indices = @transform_5, window_bounds = array<i64: 16, 128>}]} {
    %c0 = arith.constant 0 : index
    %c0_0 = arith.constant 0 : index
    %0 = vector.load %arg1[%c0, %c0_0] : memref<16x1024xbf16, #tpu.memory_space<vmem>>, vector<16x1024xbf16>
    %c0_1 = arith.constant 0 : index
    %c0_2 = arith.constant 0 : index
    %1 = vector.load %arg2[%c0_1, %c0_2] : memref<1024x128xbf16, #tpu.memory_space<vmem>>, vector<1024x128xbf16>
    %cst = arith.constant dense<0.000000e+00> : vector<16x128xf32>
    %2 = tpu.matmul %0, %1, %cst {dimension_numbers = #tpu.dot_dimension_numbers<[1], [0], [0], [1], [0, 0, 1, 1], [], []>} : vector<16x1024xbf16>, vector<1024x128xbf16>, vector<16x128xf32> -> vector<16x128xf32>
    %c0_3 = arith.constant 0 : index
    %c0_4 = arith.constant 0 : index
    %3 = vector.load %arg3[%c0_3, %c0_4] : memref<1x128xf32, #tpu.memory_space<vmem>>, vector<1x128xf32>
    %4 = vector.broadcast %3 : vector<1x128xf32> to vector<16x128xf32>
    %5 = arith.addf %2, %4 : vector<16x128xf32>
    %6 = arith.negf %5 : vector<16x128xf32>
    %7 = math.exp %6 : vector<16x128xf32>
    %cst_5 = arith.constant 1.000000e+00 : f32
    %8 = vector.broadcast %cst_5 : f32 to vector<16x128xf32>
    %9 = arith.addf %8, %7 : vector<16x128xf32>
    %10 = arith.divf %8, %9 : vector<16x128xf32>
    %11 = arith.truncf %10 : vector<16x128xf32> to vector<16x128xbf16>
    %c0_6 = arith.constant 0 : index
    %c0_7 = arith.constant 0 : index
    %12 = vector.load %arg4[%c0_6, %c0_7] : memref<128x128xbf16, #tpu.memory_space<vmem>>, vector<128x128xbf16>
    %cst_8 = arith.constant dense<0.000000e+00> : vector<16x128xf32>
    %13 = tpu.matmul %11, %12, %cst_8 {dimension_numbers = #tpu.dot_dimension_numbers<[1], [0], [0], [1], [0, 0, 1, 1], [], []>} : vector<16x128xbf16>, vector<128x128xbf16>, vector<16x128xf32> -> vector<16x128xf32>
    %c0_9 = arith.constant 0 : index
    %c0_10 = arith.constant 0 : index
    %14 = vector.load %arg5[%c0_9, %c0_10] : memref<1x128xf32, #tpu.memory_space<vmem>>, vector<1x128xf32>
    %15 = vector.broadcast %14 : vector<1x128xf32> to vector<16x128xf32>
    %16 = arith.addf %13, %15 : vector<16x128xf32>
    %17 = arith.negf %16 : vector<16x128xf32>
    %18 = math.exp %17 : vector<16x128xf32>
    %cst_11 = arith.constant 1.000000e+00 : f32
    %19 = vector.broadcast %cst_11 : f32 to vector<16x128xf32>
    %20 = arith.addf %19, %18 : vector<16x128xf32>
    %21 = arith.divf %19, %20 : vector<16x128xf32>
    %c0_12 = arith.constant 0 : index
    %c0_13 = arith.constant 0 : index
    %22 = vector.load %arg6[%c0_12, %c0_13] : memref<16x128xf32, #tpu.memory_space<vmem>>, vector<16x128xf32>
    tpu.vector_store %arg6[%c0_12, %c0_13], %21 {strides = array<i32>} : memref<16x128xf32, #tpu.memory_space<vmem>>, vector<16x128xf32>,
    return
  }
  func.func @transform_0(%arg0: i32) -> (i32, i32) {
    %c0_i32 = arith.constant 0 : i32
    %c0_i32_0 = arith.constant 0 : i32
    return %arg0, %c0_i32 : i32, i32
  }
  func.func @transform_1(%arg0: i32) -> (i32, i32) {
    %c0_i32 = arith.constant 0 : i32
    %c0_i32_0 = arith.constant 0 : i32
    %c0_i32_1 = arith.constant 0 : i32
    return %c0_i32, %c0_i32_0 : i32, i32
  }
  func.func @transform_2(%arg0: i32) -> (i32, i32) {
    %c0_i32 = arith.constant 0 : i32
    %c0_i32_0 = arith.constant 0 : i32
    %c0_i32_1 = arith.constant 0 : i32
    return %c0_i32, %c0_i32_0 : i32, i32
  }
  func.func @transform_3(%arg0: i32) -> (i32, i32) {
    %c0_i32 = arith.constant 0 : i32
    %c0_i32_0 = arith.constant 0 : i32
    %c0_i32_1 = arith.constant 0 : i32
    return %c0_i32, %c0_i32_0 : i32, i32
  }
  func.func @transform_4(%arg0: i32) -> (i32, i32) {
    %c0_i32 = arith.constant 0 : i32
    %c0_i32_0 = arith.constant 0 : i32
    %c0_i32_1 = arith.constant 0 : i32
    return %c0_i32, %c0_i32_0 : i32, i32
  }
  func.func @transform_5(%arg0: i32) -> (i32, i32) {
    %c0_i32 = arith.constant 0 : i32
    %c0_i32_0 = arith.constant 0 : i32
    return %arg0, %c0_i32 : i32, i32
  }
}

</mosaic_0001>

<bundles_post_ra>
// kernel: _forward_impl.1
= control target key start
LH: loop header
LB: loop body
LE: loop exit
PB: predicated region body
PF: predicated region fallthrough
CT: control target
= control target key end

     0   :  { %vm1189_vm0 = vmmov 0   ;;  %s1472_s1 = inlined_call_operand.vmem [shape: bf16[1024,128], index: 1, kind: input, shape index: {}]   ;;  %s1473_s0 = inlined_call_operand.vmem [shape: bf16[16,1024], index: 0, kind: input, shape index: {}]   ;;  %s1474_s3 = inlined_call_operand.vmem [shape: bf16[128,128], index: 3, kind: input, shape index: {}]   ;;  %s1475_s2 = inlined_call_operand.vmem [shape: f32[1,128], index: 2, kind: input, shape index: {}]   ;;  %s1476_s4 = inlined_call_operand.vmem [shape: f32[1,128], index: 4, kind: input, shape index: {}]   ;;  %s1477_s5 = inlined_call_operand.vmem [shape: f32[16,128], index: 5, kind: output, shape index: {}]  }
   0x1   :  { %v1100_v0 = vld [vmem:[%s1472_s1 + $0x40] sm:$0xff]   ;;  %v1104_v4 = vld [vmem:[%s1472_s1 + $0x48] sm:$0xff]   ;;  %v1108_v8 = vld [vmem:[%s1472_s1 + $0x50] sm:$0xff]  }
   0x2   :  { %v1101_v1 = vld [vmem:[%s1472_s1 + $0xc0] sm:$0xff]   ;;  %981 = vmatprep.subr.bf16.mxu0 %v1100_v0  ;;  %v1105_v5 = vld [vmem:[%s1472_s1 + $0xc8] sm:$0xff]   ;;  %v1109_v9 = vld [vmem:[%s1472_s1 + $0xd0] sm:$0xff]  }
   0x3   :  { %v1102_v2 = vld [vmem:[%s1472_s1] sm:$0xff]   ;;  %1003 = vmatprep.subr.bf16.mxu1 %v1101_v1  ;;  %v1106_v6 = vld [vmem:[%s1472_s1 + $0x8] sm:$0xff]   ;;  %v1110_v10 = vld [vmem:[%s1472_s1 + $0x10] sm:$0xff]  }
   0x4   :  { %v1103_v3 = vld [vmem:[%s1472_s1 + $0x80] sm:$0xff]   ;;  %982 = vmatpush3.bf16.msra.mxu0 %v1102_v2  ;;  %v1107_v7 = vld [vmem:[%s1472_s1 + $0x88] sm:$0xff]   ;;  %v1111_v11 = vld [vmem:[%s1472_s1 + $0x90] sm:$0xff]  }
   0x5   :  { %1004 = vmatpush3.bf16.msra.mxu1 %v1103_v3  ;;  %983 = vmatprep.subr.bf16.mxu0 %v1104_v4  ;;  %v1112_v12 = vld [vmem:[%s1472_s1 + $0x58] sm:$0xff]   ;;  %v1116_v16 = vld [vmem:[%s1472_s1 + $0x60] sm:$0xff]   ;;  %v1120_v20 = vld [vmem:[%s1472_s1 + $0x68] sm:$0xff]  }
   0x6   :  { %1005 = vmatprep.subr.bf16.mxu1 %v1105_v5  ;;  %v1113_v13 = vld [vmem:[%s1472_s1 + $0xd8] sm:$0xff]   ;;  %v1117_v17 = vld [vmem:[%s1472_s1 + $0xe0] sm:$0xff]   ;;  %v1121_v21 = vld [vmem:[%s1472_s1 + $0xe8] sm:$0xff]  }
   0x7   :  { %v1114_v14 = vld [vmem:[%s1472_s1 + $0x18] sm:$0xff]   ;;  %v1118_v18 = vld [vmem:[%s1472_s1 + $0x20] sm:$0xff]   ;;  %v1122_v22 = vld [vmem:[%s1472_s1 + $0x28] sm:$0xff]  }
   0x8   :  { %984 = vmatpush3.bf16.msra.mxu0 %v1106_v6  ;;  %v1115_v15 = vld [vmem:[%s1472_s1 + $0x98] sm:$0xff]   ;;  %v1119_v19 = vld [vmem:[%s1472_s1 + $0xa0] sm:$0xff]   ;;  %v1123_v23 = vld [vmem:[%s1472_s1 + $0xa8] sm:$0xff]  }
   0x9   :  { %1006 = vmatpush3.bf16.msra.mxu1 %v1107_v7  ;;  %985 = vmatprep.subr.bf16.mxu0 %v1108_v8  ;;  %v1124_v24 = vld [vmem:[%s1472_s1 + $0x70] sm:$0xff]   ;;  %v1128_v28 = vld [vmem:[%s1472_s1 + $0x78] sm:$0xff]   ;;  %v21_v32 = vld [vmem:[%s1473_s0] sm:$0xff] }
   0xa   :  { %1007 = vmatprep.subr.bf16.mxu1 %v1109_v9  ;;  %v1125_v25 = vld [vmem:[%s1472_s1 + $0xf0] sm:$0xff]   ;;  %v1129_v29 = vld [vmem:[%s1472_s1 + $0xf8] sm:$0xff]   ;;  %v25_v33 = vld [vmem:[%s1473_s0 + $0x20] sm:$0xff] }
   0xb   :  { %v1126_v26 = vld [vmem:[%s1472_s1 + $0x30] sm:$0xff]   ;;  %v1130_v30 = vld [vmem:[%s1472_s1 + $0x38] sm:$0xff]   ;;  %v22_v34 = vld [vmem:[%s1473_s0 + $0x8] sm:$0xff]  ;;  %v896_v35 = vcombine.low %v21_v32, %v25_v33  ;;  %v897_v36 = vcombine.high %v21_v32, %v25_v33 }
   0xc   :  { %986 = vmatpush3.bf16.msra.mxu0 %v1110_v10  ;;  %v1127_v27 = vld [vmem:[%s1472_s1 + $0xb0] sm:$0xff]   ;;  %v1131_v31 = vld [vmem:[%s1472_s1 + $0xb8] sm:$0xff]   ;;  %v26_v37 = vld [vmem:[%s1473_s0 + $0x28] sm:$0xff] }
   0xd   :  { %1008 = vmatpush3.bf16.msra.mxu1 %v1111_v11  ;;  %987 = vmatprep.subr.bf16.mxu0 %v1112_v12  ;;  %v898_v38 = vcombine.low %v22_v34, %v26_v37  ;;  %v899_v39 = vcombine.high %v22_v34, %v26_v37  ;;  %v1132_v40 = vld [vmem:[%s1472_s1 + $0x140] sm:$0xff]   ;;  %v1136_v44 = vld [vmem:[%s1472_s1 + $0x148] sm:$0xff]   ;;  %v1140_v48 = vld [vmem:[%s1472_s1 + $0x150] sm:$0xff]  }
   0xe   :  { %1009 = vmatprep.subr.bf16.mxu1 %v1113_v13  ;;  %620 = vmatprep.mubr.bf16.mxu0 %v897_v36  ;;  %v1133_v41 = vld [vmem:[%s1472_s1 + $0x1c0] sm:$0xff]   ;;  %v1137_v45 = vld [vmem:[%s1472_s1 + $0x1c8] sm:$0xff]   ;;  %v1141_v49 = vld [vmem:[%s1472_s1 + $0x1d0] sm:$0xff]  }
   0xf   :  { %661 = vmatprep.mubr.bf16.mxu1 %v899_v39  ;;  %v1134_v42 = vld [vmem:[%s1472_s1 + $0x100] sm:$0xff]   ;;  %v1138_v46 = vld [vmem:[%s1472_s1 + $0x108] sm:$0xff]   ;;  %v1142_v50 = vld [vmem:[%s1472_s1 + $0x110] sm:$0xff]  }
  0x10   :  { %988 = vmatpush3.bf16.msra.mxu0 %v1114_v14  ;;  %v1135_v43 = vld [vmem:[%s1472_s1 + $0x180] sm:$0xff]   ;;  %v1139_v47 = vld [vmem:[%s1472_s1 + $0x188] sm:$0xff]   ;;  %v1143_v51 = vld [vmem:[%s1472_s1 + $0x190] sm:$0xff]  }
  0x11   :  { %1010 = vmatpush3.bf16.msra.mxu1 %v1115_v15  ;;  %989 = vmatprep.subr.bf16.mxu0 %v1116_v16  ;;  %v1144_v52 = vld [vmem:[%s1472_s1 + $0x158] sm:$0xff]   ;;  %v1148_v56 = vld [vmem:[%s1472_s1 + $0x160] sm:$0xff]   ;;  %v1152_v60 = vld [vmem:[%s1472_s1 + $0x168] sm:$0xff]  }
  0x12   :  { %1011 = vmatprep.subr.bf16.mxu1 %v1117_v17  ;;  %v1145_v53 = vld [vmem:[%s1472_s1 + $0x1d8] sm:$0xff]   ;;  %v1149_v57 = vld [vmem:[%s1472_s1 + $0x1e0] sm:$0xff]   ;;  %v1153_v61 = vld [vmem:[%s1472_s1 + $0x1e8] sm:$0xff]   ;;  %v1188_v17 = vmov 0.0  }
  0x13   :  { %v1146_v54 = vld [vmem:[%s1472_s1 + $0x118] sm:$0xff]   ;;  %v1150_v58 = vld [vmem:[%s1472_s1 + $0x120] sm:$0xff]   ;;  %v1154_v62 = vld [vmem:[%s1472_s1 + $0x128] sm:$0xff]  }
  0x14   :  { %990 = vmatpush3.bf16.msra.mxu0 %v1118_v18  ;;  %v1147_v55 = vld [vmem:[%s1472_s1 + $0x198] sm:$0xff]   ;;  %v1151_v59 = vld [vmem:[%s1472_s1 + $0x1a0] sm:$0xff]   ;;  %v1155_v63 = vld [vmem:[%s1472_s1 + $0x1a8] sm:$0xff]  }
  0x15   :  { %1012 = vmatpush3.bf16.msra.mxu1 %v1119_v19  ;;  %991 = vmatprep.subr.bf16.mxu0 %v1120_v20  ;;  %v1156_v0 = vld [vmem:[%s1472_s1 + $0x170] sm:$0xff]   ;;  %v1160_v4 = vld [vmem:[%s1472_s1 + $0x178] sm:$0xff]   ;;  %v1164_v16 = vld [vmem:[%s1474_s3] sm:$0xff]  }
  0x16   :  { %1013 = vmatprep.subr.bf16.mxu1 %v1121_v21  ;;  %v1157_v1 = vld [vmem:[%s1472_s1 + $0x1f0] sm:$0xff]   ;;  %v1161_v5 = vld [vmem:[%s1472_s1 + $0x1f8] sm:$0xff]   ;;  %v1165_v18 = vld [vmem:[%s1474_s3 + $0x8] sm:$0xff]  }
  0x17   :  { %v1158_v2 = vld [vmem:[%s1472_s1 + $0x130] sm:$0xff]   ;;  %v1162_v6 = vld [vmem:[%s1472_s1 + $0x138] sm:$0xff]   ;;  %v1168_v21 = vld [vmem:[%s1474_s3 + $0x20] sm:$0xff]  }
  0x18   :  { %992 = vmatpush3.bf16.msra.mxu0 %v1122_v22  ;;  %v1159_v3 = vld [vmem:[%s1472_s1 + $0x1b0] sm:$0xff]   ;;  %v1163_v7 = vld [vmem:[%s1472_s1 + $0x1b8] sm:$0xff]   ;;  %v1169_v22 = vld [vmem:[%s1474_s3 + $0x28] sm:$0xff]  }
  0x19   :  { %1014 = vmatpush3.bf16.msra.mxu1 %v1123_v23  ;;  %993 = vmatprep.subr.bf16.mxu0 %v1124_v24  ;;  %v23_v8 = vld [vmem:[%s1473_s0 + $0x10] sm:$0xff]  ;;  %v24_v12 = vld [vmem:[%s1473_s0 + $0x18] sm:$0xff] }
  0x1a   :  { %1015 = vmatprep.subr.bf16.mxu1 %v1125_v25  ;;  %v27_v9 = vld [vmem:[%s1473_s0 + $0x30] sm:$0xff]  ;;  %v28_v13 = vld [vmem:[%s1473_s0 + $0x38] sm:$0xff] }
  0x1b   :  { %v900_v10 = vcombine.low %v23_v8, %v27_v9  ;;  %v901_v11 = vcombine.high %v23_v8, %v27_v9  ;;  %v902_v14 = vcombine.low %v24_v12, %v28_v13  ;;  %v903_v15 = vcombine.high %v24_v12, %v28_v13  ;;  %v1166_v19 = vld [vmem:[%s1474_s3 + $0x10] sm:$0xff]   ;;  %v1167_v20 = vld [vmem:[%s1474_s3 + $0x18] sm:$0xff]  }
  0x1c   :  { %994 = vmatpush3.bf16.msra.mxu0 %v1126_v26  ;;  %v1170_v23 = vld [vmem:[%s1474_s3 + $0x30] sm:$0xff]   ;;  %v1171_v24 = vld [vmem:[%s1474_s3 + $0x38] sm:$0xff]  }
  0x1d   :  { %1016 = vmatpush3.bf16.msra.mxu1 %v1127_v27  ;;  %995 = vmatprep.subr.bf16.mxu0 %v1128_v28  ;;  %v895_v27 = vld [vmem:[%s1475_s2] ss:$0 sm:$0xff] }
  0x1e   :  { %1017 = vmatprep.subr.bf16.mxu1 %v1129_v29 }
  0x20   :  { %996 = vmatpush3.bf16.msra.mxu0 %v1130_v30 }
  0x21   :  { %1018 = vmatpush3.bf16.msra.mxu1 %v1131_v31  ;;  %1025 = vmatprep.subr.bf16.mxu0 %v1132_v40 }
  0x22   :  { %1047 = vmatprep.subr.bf16.mxu1 %v1133_v41 }
  0x23   :  { %621 = vmatmul.mubr.bf16.vlgmr.msra.gmra.mrb[0].mxu0 %v896_v35 }
  0x24   :  { %662 = vmatmul.mubr.bf16.vlgmr.msra.gmra.mrb[0].mxu1 %v898_v38  ;;  %1026 = vmatpush3.bf16.msra.mxu0 %v1134_v42 }
  0x25   :  { %1048 = vmatpush3.bf16.msra.mxu1 %v1135_v43  ;;  %1027 = vmatprep.subr.bf16.mxu0 %v1136_v44 }
  0x26   :  { %1049 = vmatprep.subr.bf16.mxu1 %v1137_v45  ;;  %702 = vmatprep.mubr.bf16.mxu0 %v901_v11 }
  0x27   :  { %743 = vmatprep.mubr.bf16.mxu1 %v903_v15 }
  0x28   :  { %1028 = vmatpush3.bf16.msra.mxu0 %v1138_v46 }
  0x29   :  { %1050 = vmatpush3.bf16.msra.mxu1 %v1139_v47  ;;  %1029 = vmatprep.subr.bf16.mxu0 %v1140_v48 }
  0x2a   :  { %1051 = vmatprep.subr.bf16.mxu1 %v1141_v49 }
  0x2c   :  { %1030 = vmatpush3.bf16.msra.mxu0 %v1142_v50 }
  0x2d   :  { %1052 = vmatpush3.bf16.msra.mxu1 %v1143_v51  ;;  %1031 = vmatprep.subr.bf16.mxu0 %v1144_v52 }
  0x2e   :  { %1053 = vmatprep.subr.bf16.mxu1 %v1145_v53 }
  0x30   :  { %1032 = vmatpush3.bf16.msra.mxu0 %v1146_v54 }
  0x31   :  { %1054 = vmatpush3.bf16.msra.mxu1 %v1147_v55  ;;  %1033 = vmatprep.subr.bf16.mxu0 %v1148_v56 }
  0x32   :  { %1055 = vmatprep.subr.bf16.mxu1 %v1149_v57 }
  0x34   :  { %1034 = vmatpush3.bf16.msra.mxu0 %v1150_v58 }
  0x35   :  { %1056 = vmatpush3.bf16.msra.mxu1 %v1151_v59  ;;  %1035 = vmatprep.subr.bf16.mxu0 %v1152_v60 }
  0x36   :  { %1057 = vmatprep.subr.bf16.mxu1 %v1153_v61 }
  0x38   :  { %1036 = vmatpush3.bf16.msra.mxu0 %v1154_v62 }
  0x39   :  { %1058 = vmatpush3.bf16.msra.mxu1 %v1155_v63  ;;  %1037 = vmatprep.subr.bf16.mxu0 %v1156_v0 }
  0x3a   :  { %1059 = vmatprep.subr.bf16.mxu1 %v1157_v1 }
  0x3c   :  { %1038 = vmatpush3.bf16.msra.mxu0 %v1158_v2 }
  0x3d   :  { %1060 = vmatpush3.bf16.msra.mxu1 %v1159_v3  ;;  %1039 = vmatprep.subr.bf16.mxu0 %v1160_v4  ;;  %v970_v3 = vld [vmem:[%s1476_s4] ss:$0 sm:$0xff] }
  0x3e   :  { %1061 = vmatprep.subr.bf16.mxu1 %v1161_v5 }
  0x40   :  { %1040 = vmatpush3.bf16.msra.mxu0 %v1162_v6 }
  0x41   :  { %1062 = vmatpush3.bf16.msra.mxu1 %v1163_v7  ;;  %1078 = vmatprep.subr.bf16.mxu0 %v1188_v17 }
  0x43   :  { %703 = vmatmul.mubr.bf16.vlgmr.msra.gmra.mrb[4].mxu0 %v900_v10 }
  0x44   :  { %744 = vmatmul.mubr.bf16.vlgmr.msra.gmra.mrb[4].mxu1 %v902_v14  ;;  %1079 = vmatpush3.bf16.msra.mxu0 %v1164_v16 }
  0x45   :  { %1080 = vmatprep.subr.bf16.mxu0 %v1188_v17  ;;  %1094 = vmatprep.mubr.msk.bf16.mxu0 %vm1189_vm0, %v1188_v17 }
  0x48   :  { %1081 = vmatpush3.bf16.msra.mxu0 %v1165_v18 }
  0x49   :  { %1082 = vmatprep.subr.bf16.mxu0 %v1188_v17 }
  0x4c   :  { %1083 = vmatpush3.bf16.msra.mxu0 %v1166_v19 }
  0x4d   :  { %1084 = vmatprep.subr.bf16.mxu0 %v1188_v17 }
  0x50   :  { %1085 = vmatpush3.bf16.msra.mxu0 %v1167_v20 }
  0x51   :  { %1086 = vmatprep.subr.bf16.mxu0 %v1188_v17 }
  0x54   :  { %1087 = vmatpush3.bf16.msra.mxu0 %v1168_v21 }
  0x55   :  { %1088 = vmatprep.subr.bf16.mxu0 %v1188_v17 }
  0x58   :  { %1089 = vmatpush3.bf16.msra.mxu0 %v1169_v22 }
  0x59   :  { %1090 = vmatprep.subr.bf16.mxu0 %v1188_v17 }
  0x5c   :  { %1091 = vmatpush3.bf16.msra.mxu0 %v1170_v23 }
  0x5d   :  { %1092 = vmatprep.subr.bf16.mxu0 %v1188_v17 }
  0x60   :  { %1093 = vmatpush3.bf16.msra.mxu0 %v1171_v24 }
  0xf6   :  { %v997_v25 = vpop.f32.mrb[0].mxu0 }
  0xf7   :  { %v1019_v26 = vpop.f32.mrb[0].mxu1  ;;  %v998_v28 = vpop.f32.mrb[1].mxu0 }
  0xf8   :  { %v999_v29 = vadd.f32 %v998_v28, %v997_v25  ;;  %v1020_v30 = vpop.f32.mrb[1].mxu1  ;;  %v1000_v31 = vpop.f32.mrb[2].mxu0 }
  0xf9   :  { %v1021_v32 = vadd.f32 %v1020_v30, %v1019_v26  ;;  %v1022_v33 = vpop.f32.mrb[2].mxu1  ;;  %v1001_v34 = vpop.f32.mrb[3].mxu0 }
  0xfa   :  { %v623_v35 = vadd.f32 %v999_v29, %v895_v27  ;;  %v1002_v36 = vadd.f32 %v1001_v34, %v1000_v31  ;;  %v1023_v37 = vpop.f32.mrb[3].mxu1 }
  0xfb   :  { %v1024_v38 = vadd.f32 %v1023_v37, %v1022_v33 }
  0xfc   :  { %v664_v39 = vadd.f32 %v1021_v32, %v623_v35  ;;  %v626_v40 = vadd.f32 %v1002_v36, %v895_v27 }
  0xfe   :  { %v667_v41 = vadd.f32 %v1024_v38, %v626_v40 }
 0x116   :  { %v1041_v42 = vpop.f32.mrb[4].mxu0 }
 0x117   :  { %v1063_v43 = vpop.f32.mrb[4].mxu1  ;;  %v1042_v44 = vpop.f32.mrb[5].mxu0 }
 0x118   :  { %v1043_v45 = vadd.f32 %v1042_v44, %v1041_v42  ;;  %v1064_v46 = vpop.f32.mrb[5].mxu1  ;;  %v1044_v47 = vpop.f32.mrb[6].mxu0 }
 0x119   :  { %v1065_v48 = vadd.f32 %v1064_v46, %v1063_v43  ;;  %v1066_v49 = vpop.f32.mrb[6].mxu1  ;;  %v1045_v50 = vpop.f32.mrb[7].mxu0 }
 0x11a   :  { %v705_v51 = vadd.f32 %v1043_v45, %v664_v39  ;;  %v1046_v52 = vadd.f32 %v1045_v50, %v1044_v47  ;;  %v1067_v53 = vpop.f32.mrb[7].mxu1 }
 0x11b   :  { %v1068_v54 = vadd.f32 %v1067_v53, %v1066_v49 }
 0x11c   :  { %v746_v55 = vadd.f32 %v1065_v48, %v705_v51  ;;  %v708_v56 = vadd.f32 %v1046_v52, %v667_v41 }
 0x11e   :  { %v968_v57 = vmul.f32 -1.442695, %v746_v55  ;;  %v749_v58 = vadd.f32 %v1068_v54, %v708_v56 }
 0x120   :  { %1172 = vpow2.f32 %v968_v57  ;;  %v969_v59 = vmul.f32 -1.442695, %v749_v58 }
 0x122   :  { %1174 = vpow2.f32 %v969_v59 }
 0x12a   :  { %v1173_v60 = vpop.eup %1172 }
 0x12b   :  { %v758_v61 = vadd.f32 1.0, %v1173_v60 }
 0x12c   :  { %v1175_v62 = vpop.eup %1174 }
 0x12d   :  { %v759_v63 = vadd.f32 1.0, %v1175_v62  ;;  %1176 = vrcp.f32 %v758_v61 }
 0x12f   :  { %1178 = vrcp.f32 %v759_v63 }
 0x137   :  { %v1177_v0 = vpop.eup %1176 }
 0x139   :  { %v1179_v1 = vpop.eup %1178 }
 0x13a   :  { %v764_v2 = vpack.c.bf16 %v1179_v1, %v1177_v0 }
 0x13c   :  { %1095 = vmatmul.mubr.bf16.vlgmr.msra.gmra.mrb[8].mxu0 %v764_v2 }
 0x20f   :  { %v870_v4 = vpop.f32.mrb[8].mxu0 }
 0x210   :  { %v871_v5 = vadd.f32 %v970_v3, %v870_v4  ;;  %v1096_v6 = vpop.f32.mrb[9].mxu0 }
 0x211   :  { %v873_v7 = vpop.f32.mrb[10].mxu0 }
 0x212   :  { %v979_v8 = vmul.f32 -1.442695, %v871_v5  ;;  %v874_v9 = vadd.f32 %v970_v3, %v873_v7  ;;  %v1097_v10 = vpop.f32.mrb[11].mxu0 }
 0x214   :  { %1180 = vpow2.f32 %v979_v8  ;;  %v980_v11 = vmul.f32 -1.442695, %v874_v9 }
 0x216   :  { %1182 = vpow2.f32 %v980_v11 }
 0x21e   :  { %v1181_v12 = vpop.eup %1180 }
 0x21f   :  { %v883_v13 = vadd.f32 1.0, %v1181_v12 }
 0x220   :  { %v1183_v14 = vpop.eup %1182 }
 0x221   :  { %1184 = vrcp.f32 %v883_v13  ;;  %v884_v15 = vadd.f32 1.0, %v1183_v14 }
 0x223   :  { %1186 = vrcp.f32 %v884_v15 }
 0x22b   :  { %v1185_v16 = vpop.eup %1184 }
 0x22c   :  { %889 = vst [vmem:[%s1477_s5] sm:$0xff] %v1185_v16 }
 0x22d   :  { %v1187_v17 = vpop.eup %1186 }
 0x22e   :  { %890 = vst [vmem:[%s1477_s5 + $0x8] sm:$0xff] %v1187_v17 }

</bundles_post_ra>
